<compile_context>
chip_gen: v7x
topology: tpu7x:2x2x1
jax: 0.10.0
libtpu: 0.0.40
codegen_flags: <defaults>
</compile_context>

<pallas_src>
import jax
import jax.numpy as jnp
from jax.experimental import pallas as pl
from jax.experimental.pallas import tpu as pltpu

_LANES = 128


def _cdiv(a, b):
    return -(-a // b)


def _alpha_comp_kernel_inplace(src_ref, alpha_ref, out_ref):
    """32-bit path: accumulate directly into the output block (resident across D)."""
    k = pl.program_id(2)

    @pl.when(k == 0)
    def _init():
        # depth D-1: composite starts as the back-most layer (no alpha applied).
        out_ref[...] = src_ref[...]

    @pl.when(k > 0)
    def _composite():
        # back-to-front over-compositing: comp = comp + a * (src - comp)
        a = alpha_ref[...]
        s = src_ref[...]
        comp = out_ref[...]
        out_ref[...] = comp + a * (s - comp)


def _alpha_comp_kernel_f32acc(src_ref, alpha_ref, out_ref, acc_ref):
    """Sub-32-bit path: accumulate in an f32 VMEM scratch, cast once at the end."""
    k = pl.program_id(2)

    @pl.when(k == 0)
    def _init():
        acc_ref[...] = src_ref[...].astype(jnp.float32)

    @pl.when(k > 0)
    def _composite():
        a = alpha_ref[...].astype(jnp.float32)
        s = src_ref[...].astype(jnp.float32)
        comp = acc_ref[...]
        acc_ref[...] = comp + a * (s - comp)

    @pl.when(k == pl.num_programs(2) - 1)
    def _store():
        out_ref[...] = acc_ref[...].astype(out_ref.dtype)


def alpha_composition(src_imgs, alpha_imgs, *, vmem_budget_bytes=None):
    """src_imgs: (B, D, C, H, W), alpha_imgs: (B, D, 1, H, W) -> (B, C, H, W)."""
    b, d, c, h, w = src_imgs.shape
    assert alpha_imgs.shape == (b, d, 1, h, w), "alpha_imgs must be (B, D, 1, H, W)"

    in_dt = src_imgs.dtype
    in_isize = jnp.dtype(in_dt).itemsize
    use_scratch = in_isize < 4                      # bf16/f16/int8 -> f32 accumulator
    align = {4: 8, 2: 16, 1: 32}.get(in_isize, 8)   # dtype-aware sublane packing

    # --- per-generation VMEM budget / limit -----------------------------------
    try:
        vmem_cap = pltpu.get_tpu_info().vmem_capacity_bytes
    except Exception:  # unknown part -> assume the smallest (v7x: 64 MiB per TC)
        vmem_cap = 64 * 1024 * 1024
    if vmem_cap >= 128 * 1024 * 1024:               # v5e / v6e
        budget = 48 * 1024 * 1024
        vmem_limit = 64 * 1024 * 1024
        row_cap = 2048
    else:                                           # v7x
        budget = 16 * 1024 * 1024
        vmem_limit = 32 * 1024 * 1024
        row_cap = 1024
    if vmem_budget_bytes is not None:
        budget = vmem_budget_bytes

    # --- layout selection (no HBM repack in either case) -----------------------
    hw = h * w
    lane_dense = (hw % _LANES == 0)
    if lane_dense:
        n_rows, lanes, lane_pad = hw // _LANES, _LANES, _LANES
        src = src_imgs.reshape(b, d, c, n_rows, _LANES)      # zero-copy reshape
        alpha = alpha_imgs.reshape(b, d, 1, n_rows, _LANES)
    else:
        # Natural layout: tile rows of H, W stays the full last dim (always legal).
        n_rows, lanes = h, w
        lane_pad = _cdiv(w, _LANES) * _LANES                  # vreg lane footprint
        src, alpha = src_imgs, alpha_imgs

    # --- HW-row tile selection --------------------------------------------------
    # per sublane-row per grid step: double-buffered src + alpha + out (+ f32 acc)
    bytes_per_row = lane_pad * (2 * c * in_isize        # src  (2 buffers)
                                + 2 * 1 * in_isize      # alpha(2 buffers)
                                + 2 * c * in_isize      # out  (2 buffers)
                                + (c * 4 if use_scratch else 0))
    max_rows = max(align, min(row_cap, (budget // bytes_per_row) // align * align))
    if n_rows <= max_rows:
        t_rows, n_tiles = n_rows, 1                     # full dim -> no /align need
    else:
        t_rows = max_rows                               # multiple of `align`
        n_tiles = _cdiv(n_rows, t_rows)

    # v7x megacore balance: ensure the parallel axes carry at least 2 tiles of work.
    if b * n_tiles < 2 and n_rows >= 2 * align:
        t_rows = _cdiv(_cdiv(n_rows, 2), align) * align
        n_tiles = _cdiv(n_rows, t_rows)

    grid = (b, n_tiles, d)

    # --- BlockSpecs --------------------------------------------------------------
    src_spec = pl.BlockSpec(
        (pl.Squeezed(), pl.Squeezed(), c, t_rows, lanes),
        lambda bi, ti, k: (bi, d - 1 - k, 0, ti, 0))
    # The back layer (k==0) needs no alpha: map it to the same block as k==1 so the
    # DMA is skipped (block index unchanged between consecutive steps).
    alpha_spec = pl.BlockSpec(
        (pl.Squeezed(), pl.Squeezed(), 1, t_rows, lanes),
        lambda bi, ti, k: (bi, jnp.maximum(d - 1 - jnp.maximum(k, 1), 0), 0, ti, 0))
    out_spec = pl.BlockSpec(
        (pl.Squeezed(), c, t_rows, lanes),
        lambda bi, ti, k: (bi, 0, ti, 0))

    if use_scratch:
        kernel = _alpha_comp_kernel_f32acc
        scratch_shapes = [pltpu.VMEM((c, t_rows, lanes), jnp.float32)]
    else:
        kernel = _alpha_comp_kernel_inplace
        scratch_shapes = []

    out = pl.pallas_call(
        kernel,
        out_shape=jax.ShapeDtypeStruct((b, c, n_rows, lanes), in_dt),
        grid=grid,
        in_specs=[src_spec, alpha_spec],
        out_specs=out_spec,
        scratch_shapes=scratch_shapes,
        compiler_params=pltpu.CompilerParams(
            dimension_semantics=("parallel", "parallel", "arbitrary"),
            vmem_limit_bytes=vmem_limit,
        ),
    )(src, alpha)

    return out.reshape(b, c, h, w)


def _reference(src_imgs, alpha_imgs):
    num_d = src_imgs.shape[1]
    comp = src_imgs[:, num_d - 1]
    for d in reversed(range(num_d - 1)):
        a = alpha_imgs[:, d]
        comp = src_imgs[:, d] * a + (1.0 - a) * comp
    return comp


if __name__ == "__main__":
    key = jax.random.PRNGKey(0)
    k1, k2, k3, k4, k5, k6, k7, k8 = jax.random.split(key, 8)

    # 1) lane-dense path (H*W multiple of 128), f32, B >= 2
    B, D, C, H, W = 2, 4, 3, 16, 16
    src = jax.random.uniform(k1, (B, D, C, H, W), dtype=jnp.float32)
    alpha = jax.random.uniform(k2, (B, D, 1, H, W), dtype=jnp.float32)
    out = jax.block_until_ready(alpha_composition(src, alpha))
    ref = _reference(src, alpha)
    assert out.shape == (B, C, H, W)
    assert jnp.allclose(out, ref, atol=1e-5, rtol=1e-5)

    # 2) ragged H*W (not a multiple of 128): natural (H, W) tiling, no HBM repack
    B2, D2, C2, H2, W2 = 1, 3, 3, 10, 10
    src2 = jax.random.uniform(k3, (B2, D2, C2, H2, W2), dtype=jnp.float32)
    alpha2 = jax.random.uniform(k4, (B2, D2, 1, H2, W2), dtype=jnp.float32)
    out2 = jax.block_until_ready(alpha_composition(src2, alpha2))
    ref2 = _reference(src2, alpha2)
    assert out2.shape == (B2, C2, H2, W2)
    assert jnp.allclose(out2, ref2, atol=1e-5, rtol=1e-5)

    # 3) bf16 inputs: exercises the f32-scratch accumulator path
    B3, D3, C3, H3, W3 = 1, 5, 3, 32, 64
    src3f = jax.random.uniform(k5, (B3, D3, C3, H3, W3), dtype=jnp.float32)
    alpha3f = jax.random.uniform(k6, (B3, D3, 1, H3, W3), dtype=jnp.float32)
    src3 = src3f.astype(jnp.bfloat16)
    alpha3 = alpha3f.astype(jnp.bfloat16)
    out3 = jax.block_until_ready(alpha_composition(src3, alpha3))
    ref3 = _reference(src3.astype(jnp.float32), alpha3.astype(jnp.float32))
    assert out3.dtype == jnp.bfloat16
    assert jnp.allclose(out3.astype(jnp.float32), ref3, atol=2e-2, rtol=2e-2)

    # 4) B == 1 single image: HW tile split in two so both v7x TensorCores get work
    B4, D4, C4, H4, W4 = 1, 4, 3, 32, 64
    src4 = jax.random.uniform(k7, (B4, D4, C4, H4, W4), dtype=jnp.float32)
    alpha4 = jax.random.uniform(k8, (B4, D4, 1, H4, W4), dtype=jnp.float32)
    out4 = jax.block_until_ready(alpha_composition(src4, alpha4))
    ref4 = _reference(src4, alpha4)
    assert jnp.allclose(out4, ref4, atol=1e-5, rtol=1e-5)

    print("KERNEL_OK")
</pallas_src>

<mosaic_0001>
module attributes {stable_mosaic.version = 11 : i64} {
  func.func @_alpha_comp_kernel_inplace(%arg0: i32, %arg1: i32, %arg2: i32, %arg3: memref<1x1x3x2x128xf32, #tpu.memory_space<vmem>>, %arg4: memref<1x1x1x2x128xf32, #tpu.memory_space<vmem>>, %arg5: memref<1x3x2x128xf32, #tpu.memory_space<vmem>>) attributes {dimension_semantics = [#tpu.dimension_semantics<parallel>, #tpu.dimension_semantics<parallel>, #tpu.dimension_semantics<arbitrary>], iteration_bounds = array<i64: 2, 1, 4>, scalar_prefetch = 0 : i64, scratch_operands = 0 : i64, tpu.core_type = #tpu.core_type<tc>, window_params = [{transform_indices = @transform_0, window_bounds = array<i64: 1, 1, 3, 2, 128>}, {transform_indices = @transform_1, window_bounds = array<i64: 1, 1, 1, 2, 128>}, {transform_indices = @transform_2, window_bounds = array<i64: 1, 3, 2, 128>}]} {
    %c0_i32 = arith.constant 0 : i32
    %0 = arith.cmpi eq, %arg2, %c0_i32 : i32
    %1 = arith.extui %0 : i1 to i32
    %c0_i32_0 = arith.constant 0 : i32
    %2 = arith.cmpi ne, %1, %c0_i32_0 : i32
    scf.if %2 {
      %c0 = arith.constant 0 : index
      %c0_3 = arith.constant 0 : index
      %c0_4 = arith.constant 0 : index
      %c0_5 = arith.constant 0 : index
      %c0_6 = arith.constant 0 : index
      %6 = vector.load %arg3[%c0, %c0_3, %c0_4, %c0_5, %c0_6] : memref<1x1x3x2x128xf32, #tpu.memory_space<vmem>>, vector<1x1x3x2x128xf32>
      %7 = vector.shape_cast %6 : vector<1x1x3x2x128xf32> to vector<3x2x128xf32>
      %c0_7 = arith.constant 0 : index
      %c0_8 = arith.constant 0 : index
      %c0_9 = arith.constant 0 : index
      %c0_10 = arith.constant 0 : index
      %8 = vector.load %arg5[%c0_7, %c0_8, %c0_9, %c0_10] : memref<1x3x2x128xf32, #tpu.memory_space<vmem>>, vector<1x3x2x128xf32>
      %9 = vector.shape_cast %8 : vector<1x3x2x128xf32> to vector<3x2x128xf32>
      %10 = vector.shape_cast %7 : vector<3x2x128xf32> to vector<1x3x2x128xf32>
      tpu.vector_store %arg5[%c0_7, %c0_8, %c0_9, %c0_10], %10 {strides = array<i32>} : memref<1x3x2x128xf32, #tpu.memory_space<vmem>>, vector<1x3x2x128xf32>,
    } else {
    }
    %c0_i32_1 = arith.constant 0 : i32
    %3 = arith.cmpi sgt, %arg2, %c0_i32_1 : i32
    %4 = arith.extui %3 : i1 to i32
    %c0_i32_2 = arith.constant 0 : i32
    %5 = arith.cmpi ne, %4, %c0_i32_2 : i32
    scf.if %5 {
      %c0 = arith.constant 0 : index
      %c0_3 = arith.constant 0 : index
      %c0_4 = arith.constant 0 : index
      %c0_5 = arith.constant 0 : index
      %c0_6 = arith.constant 0 : index
      %6 = vector.load %arg4[%c0, %c0_3, %c0_4, %c0_5, %c0_6] : memref<1x1x1x2x128xf32, #tpu.memory_space<vmem>>, vector<1x1x1x2x128xf32>
      %7 = vector.shape_cast %6 : vector<1x1x1x2x128xf32> to vector<1x2x128xf32>
      %c0_7 = arith.constant 0 : index
      %c0_8 = arith.constant 0 : index
      %c0_9 = arith.constant 0 : index
      %c0_10 = arith.constant 0 : index
      %c0_11 = arith.constant 0 : index
      %8 = vector.load %arg3[%c0_7, %c0_8, %c0_9, %c0_10, %c0_11] : memref<1x1x3x2x128xf32, #tpu.memory_space<vmem>>, vector<1x1x3x2x128xf32>
      %9 = vector.shape_cast %8 : vector<1x1x3x2x128xf32> to vector<3x2x128xf32>
      %c0_12 = arith.constant 0 : index
      %c0_13 = arith.constant 0 : index
      %c0_14 = arith.constant 0 : index
      %c0_15 = arith.constant 0 : index
      %10 = vector.load %arg5[%c0_12, %c0_13, %c0_14, %c0_15] : memref<1x3x2x128xf32, #tpu.memory_space<vmem>>, vector<1x3x2x128xf32>
      %11 = vector.shape_cast %10 : vector<1x3x2x128xf32> to vector<3x2x128xf32>
      %12 = arith.subf %9, %11 : vector<3x2x128xf32>
      %13 = vector.broadcast %7 : vector<1x2x128xf32> to vector<3x2x128xf32>
      %14 = arith.mulf %13, %12 : vector<3x2x128xf32>
      %15 = arith.addf %11, %14 : vector<3x2x128xf32>
      %c0_16 = arith.constant 0 : index
      %c0_17 = arith.constant 0 : index
      %c0_18 = arith.constant 0 : index
      %c0_19 = arith.constant 0 : index
      %16 = vector.load %arg5[%c0_16, %c0_17, %c0_18, %c0_19] : memref<1x3x2x128xf32, #tpu.memory_space<vmem>>, vector<1x3x2x128xf32>
      %17 = vector.shape_cast %16 : vector<1x3x2x128xf32> to vector<3x2x128xf32>
      %18 = vector.shape_cast %15 : vector<3x2x128xf32> to vector<1x3x2x128xf32>
      tpu.vector_store %arg5[%c0_16, %c0_17, %c0_18, %c0_19], %18 {strides = array<i32>} : memref<1x3x2x128xf32, #tpu.memory_space<vmem>>, vector<1x3x2x128xf32>,
    } else {
    }
    return
  }
  func.func @transform_0(%arg0: i32, %arg1: i32, %arg2: i32) -> (i32, i32, i32, i32, i32) {
    %c3_i32 = arith.constant 3 : i32
    %0 = arith.subi %c3_i32, %arg2 : i32
    %c0_i32 = arith.constant 0 : i32
    %c0_i32_0 = arith.constant 0 : i32
    %c0_i32_1 = arith.constant 0 : i32
    return %arg0, %0, %c0_i32, %arg1, %c0_i32_0 : i32, i32, i32, i32, i32
  }
  func.func @transform_1(%arg0: i32, %arg1: i32, %arg2: i32) -> (i32, i32, i32, i32, i32) {
    %c1_i32 = arith.constant 1 : i32
    %0 = arith.maxsi %arg2, %c1_i32 : i32
    %c3_i32 = arith.constant 3 : i32
    %1 = arith.subi %c3_i32, %0 : i32
    %c0_i32 = arith.constant 0 : i32
    %2 = arith.maxsi %1, %c0_i32 : i32
    %c0_i32_0 = arith.constant 0 : i32
    %c0_i32_1 = arith.constant 0 : i32
    %c0_i32_2 = arith.constant 0 : i32
    return %arg0, %2, %c0_i32_0, %arg1, %c0_i32_1 : i32, i32, i32, i32, i32
  }
  func.func @transform_2(%arg0: i32, %arg1: i32, %arg2: i32) -> (i32, i32, i32, i32) {
    %c0_i32 = arith.constant 0 : i32
    %c0_i32_0 = arith.constant 0 : i32
    %c0_i32_1 = arith.constant 0 : i32
    return %arg0, %c0_i32, %arg1, %c0_i32_0 : i32, i32, i32, i32
  }
}

</mosaic_0001>

<bundles_post_ra>
// kernel: tpu_custom_call.1
= control target key start
LH: loop header
LB: loop body
LE: loop exit
PB: predicated region body
PF: predicated region fallthrough
CT: control target
= control target key end

     0   :  { %s1189_s0 = inlined_call_operand.hbm [shape: f32[2,4,3,2,128], index: 0, kind: input, shape index: {}]   ;;  %s1190_s1 = inlined_call_operand.hbm [shape: f32[2,4,1,2,128], index: 1, kind: input, shape index: {}]   ;;  %s1191_s2 = inlined_call_operand.hbm [shape: f32[2,3,2,128], index: 2, kind: output, shape index: {}]  }
   0x1   :  { %1201 = sst [smem:[#allocation16_spill]] %s1189_s0 }
   0x2   :  { %1202 = sst [smem:[#allocation17_spill]] %s1191_s2 }
   0x3   :  { %7 = vsyncpa [#allocation3], 0 }
   0x4   :  { %9 = vsyncpa [#allocation3 + $0x1], 0 }
   0x5   :  { %10 = vsyncpa [#allocation6], 0 }
   0x6   :  { %12 = vsyncpa [#allocation6 + $0x1], 0 }
   0x7   :  { %13 = vsyncpa [#allocation4], 0 }
   0x8   :  { %15 = vsyncpa [#allocation4 + $0x1], 0  ;;  %s815_s9 = smov 0   ;;  %s817_s10 = smov 0  }
   0x9   :  { %s819_s11 = smov 0   ;;  %s821_s12 = smov 0  }
   0xa   :  { %s823_s13 = smov 0   ;;  %s825_s14 = smov 0  }
   0xb   :  { %s827_s15 = smov 0   ;;  %s829_s16 = smov 0  }
   0xc   :  { %s831_s17 = smov 0   ;;  %s833_s18 = smov 0  }
   0xd   :  { %s835_s19 = smov 0   ;;  %s837_s20 = smov 0  }
   0xe   :  { %s839_s21 = smov 0   ;;  %s841_s22 = smov 0  }
   0xf LB: > { %1203 = sst [smem:[#allocation11_spill]] %s775_s18  ;;  %s33_s23 = sadd.s32 1, %s783_s20  ;;  %s791_s22 = sphi %s841_s22, %s21_s22   ;;  %s787_s21 = sphi %s839_s21, %s1248_s21   ;;  %s783_s20 = sphi %s837_s20, %s1236_s20   ;;  %s779_s19 = sphi %s835_s19, %s1247_s19   ;;  %s775_s18 = sphi %s833_s18, %s1235_s18   ;;  %s771_s17 = sphi %s831_s17, %s1246_s17   ;;  %s767_s16 = sphi %s829_s16, %s1245_s16   ;;  %s763_s15 = sphi %s827_s15, %s1244_s15   ;;  %s759_s14 = sphi %s825_s14, %s1243_s14   ;;  %s755_s13 = sphi %s823_s13, %s1242_s13   ;;  %s751_s12 = sphi %s821_s12, %s1241_s12   ;;  %s747_s11 = sphi %s819_s11, %s1240_s11   ;;  %s743_s10 = sphi %s817_s10, %s1239_s10   ;;  %s739_s9 = sphi %s815_s9, %s1238_s9  }
  0x10   : > { %1204 = sst [smem:[#allocation12_spill]] %s779_s19  ;;  %s44_s24 = ssub.s32 3, %s783_s20 }
  0x11   : > { %1205 = sst [smem:[#allocation13_spill]] %s783_s20  ;;  %p887_p0 = scmp.ge.s32.totalorder %s33_s23, 4 }
  0x12   : > { %p60_p1 = scmp.ne.s32.totalorder %s771_s17, %s767_s16  ;;  %p1194_p2 = scmp.eq.s32.totalorder %s791_s22, 0 }
  0x13   : > { %s1250_s23 = smov (%p887_p0, %s33_s23), 0  ;;  %p1193_p5 = scmp.lt.s32.totalorder %s791_s22, 8 }
  0x14   : > { %1207 = sst [smem:[#allocation14_spill]] %s1250_s23  ;;  %p62_p3 = por %p1194_p2, %p60_p1 }
  0x15   : > { %s45_s27 = ssub.s32 3, %s1250_s23  ;;  %s158_s29 = sand.u32 1, %s771_s17  }
  0x16   : > { %s904_s28 = ssub.s32 %s44_s24, %s45_s27  ;;  %s441_s30 = smul.u32 3, %s44_s24 }
  0x17   : > { %s440_s3 = smul.u32 6, %s158_s29  ;;  %p911_p6 = pnand %p1193_p5, %p62_p3 }
  0x18   : > { %s442_s4 = smul.u32 12, %s787_s21  ;;  %s1209_s0 = sld [smem:[#allocation16_spill]] }
  0x19   : > { %s162_s7 = scalar_lea.vmem [#allocation2], %s440_s3  ;;  %s923_s24 = scalar_lea.sflag [#allocation3], %s158_s29 }
  0x1a   : > { %s170_s6 = sadd.s32 %s442_s4, %s441_s30  ;;  %s173_s8 = sshll.u32 %s162_s7, 4  ;;  %s915_s8 = int_to_ptr.vmem [resolvable:$true] %s173_s8 }
  0x1b   : > { %s429_s26 = sshll.u32 %s170_s6, 5  ;;  %p583_p9 = pneg %p911_p6 }
  0x1e   : > { %s920_s19 = scalar_lea.hbm %s1209_s0, %s429_s26  ;;  %s586_s2 = scalar_lea.hbm %s1209_s0, 768 }
  0x1f   : > { %s581_s18 = scalar_lea.hbm %s920_s19, 96  ;;  %p587_p12 = scmp.lt.u32.totalorder %s920_s19, %s1209_s0 }
  0x20   : > { %p582_p8 = scmp.ne.s32.totalorder %s920_s19, %s581_s18  ;;  %p588_p13 = scmp.lt.u32.totalorder %s586_s2, %s581_s18 }
  0x21   : > { %p590_p3 = scmp.lt.u32.totalorder %s581_s18, %s920_s19 }
  0x22   : > { %p584_p10 = pnand %p583_p9, %p582_p8  ;;  %p589_p1 = por %p588_p13, %p587_p12 }
  0x24   : > { %p585_p11 = pneg %p584_p10  ;;  %p591_p5 = por %p590_p3, %p589_p1 }
  0x26   : > { %p592_p2 = pnand %p591_p5, %p585_p11 }
  0x28   : > { %595 = shalt.err (!%p592_p2)
}
  0x29   : > { %s596_s29 = scalar_lea.vmem %s915_s8, 96  ;;  %s793_s6 = smov [#allocation2]  }
  0x2a   : > { %p597_p8 = scmp.ne.s32.totalorder %s915_s8, %s596_s29  ;;  %s601_s7 = sshll.u32 %s793_s6, 4  ;;  %s602_s7 = int_to_ptr.vmem [resolvable:$false] %s601_s7 }
  0x2b   : > { %s603_s27 = scalar_lea.vmem %s602_s7, 192  ;;  %p604_p7 = scmp.lt.s32.totalorder %s915_s8, %s602_s7 }
  0x2c   : > { %p599_p10 = pnand %p597_p8, %p583_p9  ;;  %p605_p12 = scmp.lt.s32.totalorder %s603_s27, %s596_s29 }
  0x2e   : > { %p600_p4 = pneg %p599_p10  ;;  %p606_p13 = por %p605_p12, %p604_p7 }
  0x30   : > { %p607_p1 = pnand %p606_p13, %p600_p4 }
  0x32   : > { %610 = shalt.err (!%p607_p1)
}
  0x33   : > { %s794_s18 = smov 32   ;;  %s795_s30 = smov 2  }
  0x34   : > { %455 = dma.hbm_to_vmem [thread:$0]  (!%p911_p6), %s920_s19, 96, %s915_s8, %s923_s24, %s794_s18, %s794_s18, %s795_s30  }
  0x35   : > { %p207_p2 = scmp.lt.s32.totalorder %s791_s22, 9  ;;  %p1210_p4 = scmp.ge.s32.totalorder %s791_s22, 1 }
  0x36   : > { %s425_s2 = sadd.s32 4294967295, %s791_s22   ;;  %s426_s26 = sadd.s32 4294967294, %s791_s22  }
  0x37   : > { %p954_p5 = pnand %p1210_p4, %p207_p2  ;;  %s40_s4 = sadd.s32 1, %s787_s21 }
  0x38   : > { %p963_p7 = scmp.eq.s32.totalorder %s425_s2, 0  ;;  %s1252_s4 = smov (!%p887_p0, %s40_s4), %s787_s21 }
  0x39   : > { %p1213_p6 = scmp.ne.s32.totalorder %s767_s16, %s763_s15  ;;  %p76_p11 = scmp.gt.s32.totalorder %s783_s20, 1 }
  0x3a   : > { %p42_p3 = scmp.ge.s32.totalorder %s1252_s4, 2  ;;  %p81_p8 = scmp.gt.s32.totalorder %s1250_s23, 1 }
  0x3b   : > { %p975_p9 = por %p963_p7, %p1213_p6  ;;  %s93_s15 = sadd.s32 1, %s759_s14 }
  0x3c   : > { %s77_s8 = scalar_select %p76_p11, %s783_s20, 1 }
  0x3d   : > { %s1214_s19 = scalar_select %p975_p9, 1, 0 }
  0x3e   : > { %s1254_s4 = smov (%p42_p3, %s1252_s4), 0  ;;  %s78_s25 = ssub.s32 3, %s77_s8 }
  0x3f   : > { %1215 = sst [smem:[#allocation15_spill]] %s1254_s4  ;;  %s46_s24 = ssub.s32 %s787_s21, %s1254_s4 }
  0x40   : > { %p79_p0 = scmp.gt.s32.totalorder %s78_s25, 0  ;;  %s48_s29 = sor.u32 %s904_s28, %s46_s24 }
  0x41   : > { %p100_p10 = scmp.ne.s32.totalorder %s759_s14, %s755_s13  ;;  %p51_p12 = scmp.eq.s32.totalorder %s48_s29, 0 }
  0x42   : > { %p106_p13 = scmp.ne.s32.totalorder %s755_s13, %s751_s12  ;;  %s1256_s25 = smov (!%p79_p0, %s78_s25), 0 }
  0x43   : > { %s1216_s6 = sadd.s32 1, %s771_s17  ;;  %p1217_p1 = scmp.eq.s32.totalorder %s791_s22, 0 }
  0x44   : > { %s995_s7 = scalar_select %p51_p12, %s771_s17, %s1216_s6  }
  0x45   : > { %s82_s27 = scalar_select %p81_p8, %s1250_s23, 1 }
  0x46   : > { %p1000_p2 = por %p100_p10, %p1217_p1  ;;  %p1006_p4 = por %p106_p13, %p963_p7 }
  0x47   : > { %s83_s30 = ssub.s32 3, %s82_s27  ;;  %p119_p6 = scmp.eq.s32.totalorder %s46_s24, 0 }
  0x48   : > { %s1219_s28 = scalar_select %p1006_p4, 1, 0 }
  0x49   : > { %p84_p11 = scmp.gt.s32.totalorder %s83_s30, 0  ;;  %s121_s12 = sadd.s32 1, %s747_s11 }
  0x4a   : > { %s1012_s8 = scalar_select %p119_p6, %s747_s11, %s121_s12  }
  0x4b   : > { %s1258_s30 = smov (!%p84_p11, %s83_s30), 0  ;;  %p131_p3 = scmp.ne.s32.totalorder %s747_s11, %s743_s10 }
  0x4c   : > { %p132_p8 = scmp.eq.s32.totalorder %s425_s2, 7  ;;  %s87_s29 = ssub.s32 %s1256_s25, %s1258_s30 }
  0x4d   : > { %p137_p0 = scmp.ne.s32.totalorder %s743_s10, %s739_s9  ;;  %s88_s5 = sor.u32 %s87_s29, %s46_s24 }
  0x4e   : > { %p1020_p7 = por %p132_p8, %p131_p3  ;;  %p91_p10 = scmp.eq.s32.totalorder %s88_s5, 0 }
  0x4f   : > { %p138_p12 = scmp.eq.s32.totalorder %s426_s26, 7  ;;  %s183_s27 = sand.u32 1, %s759_s14  }
  0x50   : > { %s1220_s6 = scalar_select %p1020_p7, 1, 0 }
  0x51   : > { %s431_s0 = sshll.u32 %s787_s21, 2  ;;  %p1031_p13 = por %p138_p12, %p137_p0 }
  0x52   : > { %s1029_s12 = scalar_select %p91_p10, %s759_s14, %s93_s15  }
  0x53   : > { %s1221_s4 = scalar_select %p1031_p13, 1, 0 }
  0x54   : > { %s430_s2 = sshll.u32 %s183_s27, 1  ;;  %s198_s30 = sadd.s32 %s431_s0, %s1256_s25 }
  0x55   : > { %s432_s23 = sshll.u32 %s198_s30, 5  ;;  %s187_s26 = scalar_lea.vmem [#allocation5], %s430_s2 }
  0x56   : > { %s1038_s29 = scalar_lea.hbm %s1190_s1, %s432_s23  ;;  %s202_s5 = sshll.u32 %s187_s26, 4  ;;  %s1040_s5 = int_to_ptr.vmem [resolvable:$true] %s202_s5 }
  0x57   : > { %p1222_p1 = scmp.lt.s32.totalorder %s791_s22, 8  ;;  %s184_s0 = scalar_lea.sflag [#allocation6], %s183_s27 }
  0x58   : > { %s611_s20 = scalar_lea.hbm %s1038_s29, 32  ;;  %s616_s18 = scalar_lea.hbm %s1190_s1, 256 }
  0x59   : > { %p1046_p6 = pnand %p1222_p1, %p1000_p2  ;;  %p612_p11 = scmp.ne.s32.totalorder %s1038_s29, %s611_s20 }
  0x5a   : > { %p617_p2 = scmp.lt.u32.totalorder %s1038_s29, %s1190_s1  ;;  %p618_p10 = scmp.lt.u32.totalorder %s616_s18, %s611_s20 }
  0x5b   : > { %p613_p3 = pneg %p1046_p6  ;;  %p620_p1 = scmp.lt.u32.totalorder %s611_s20, %s1038_s29 }
  0x5c   : > { %p619_p12 = por %p618_p10, %p617_p2 }
  0x5d   : > { %p614_p8 = pnand %p613_p3, %p612_p11 }
  0x5e   : > { %p621_p13 = por %p620_p1, %p619_p12 }
  0x5f   : > { %p615_p0 = pneg %p614_p8 }
  0x61   : > { %p622_p7 = pnand %p621_p13, %p615_p0 }
  0x63   : > { %625 = shalt.err (!%p622_p7)
}
  0x64   : > { %s626_s27 = scalar_lea.vmem %s1040_s5, 32  ;;  %s796_s24 = smov [#allocation5]  }
  0x65   : > { %p627_p11 = scmp.ne.s32.totalorder %s1040_s5, %s626_s27  ;;  %s631_s26 = sshll.u32 %s796_s24, 4  ;;  %s632_s26 = int_to_ptr.vmem [resolvable:$false] %s631_s26 }
  0x66   : > { %s633_s23 = scalar_lea.vmem %s632_s26, 64  ;;  %p634_p9 = scmp.lt.s32.totalorder %s1040_s5, %s632_s26 }
  0x67   : > { %p629_p8 = pnand %p627_p11, %p613_p3  ;;  %p635_p2 = scmp.lt.s32.totalorder %s633_s23, %s626_s27 }
  0x69   : > { %p630_p4 = pneg %p629_p8  ;;  %p636_p10 = por %p635_p2, %p634_p9 }
  0x6b   : > { %p637_p12 = pnand %p636_p10, %p630_p4 }
  0x6d   : > { %640 = shalt.err (!%p637_p12)
}
  0x6e   : > { %458 = dma.hbm_to_vmem [thread:$0]  (!%p1046_p6), %s1038_s29, 32, %s1040_s5, %s184_s0  }
  0x6f   : > { %211 = sbr.rel (%p954_p5) target bundleno = 183 (0xb7), region = 28  ;;  %s213_s20 = sand.u32 (!%p954_p5), 1, %s767_s16  }
  0x70   : > { %s443_s25 = smul.u32 (!%p954_p5), 6, %s213_s20  ;;  %s214_s18 = scalar_lea.sflag (!%p954_p5), [#allocation3], %s213_s20 }
  0x71   : > { %p1224_p7 = scmp.ne.s32.totalorder (!%p954_p5), %s1214_s19, 0 }
  0x72   : > { %s217_s2 = scalar_lea.vmem (!%p954_p5), [#allocation2], %s443_s25 }
  0x76   : > { %726 = dma.done.wait (%p1224_p7), %s214_s18, 96  }
  0x77   : > { %728 = vsyncadd (%p1224_p7), %s214_s18, 4294967200  ;;  %s222_s15 = sand.u32 1, %s755_s13   ;;  %p1225_p9 = scmp.ne.s32.totalorder %s1219_s28, 0 }
  0x78   : > { %s434_s30 = sshll.u32 %s222_s15, 1  ;;  %s223_s27 = scalar_lea.sflag [#allocation6], %s222_s15 }
  0x79   : > { %s226_s29 = scalar_lea.vmem [#allocation5], %s434_s30 }
  0x7a   : > { %730 = dma.done.wait (%p1225_p9), %s223_s27, 32  }
  0x7b   : > { %732 = vsyncadd (%p1225_p9), %s223_s27, 4294967264  ;;  %s249_s3 = sand.u32 1, %s743_s10   ;;  %s1226_s19 = sld [smem:[#allocation11_spill]] }
  0x7c   : > { %s444_s5 = smul.u32 6, %s249_s3 }
  0x7e   : > { %s1090_s0 = scalar_lea.vmem [#allocation7], %s444_s5 }
  0x81   : > { %p435_p5 = scmp.ne.s32.totalorder %s1226_s19, 0 }
  0x82   : > { %v262_v0 = vld [vmem:[%s217_s2] sm:$0xf] (!%p435_p5)   ;;  %v264_v1 = vld [vmem:[%s217_s2 + $0x4] sm:$0x3] (!%p435_p5) }
  0x83   : > { %261 = sbr.rel (%p435_p5) target bundleno = 138 (0x8a), region = 40  ;;  %265 = vst [vmem:[%s1090_s0] sm:$0xf] (!%p435_p5), %v262_v0   ;;  %267 = vst [vmem:[%s1090_s0 + $0x4] sm:$0x3] (!%p435_p5), %v264_v1 }
  0x8a PF: > { %s1227_s24 = sld [smem:[#allocation11_spill]] }
  0x90   : > { %p436_p4 = scmp.le.s32.totalorder %s1227_s24, 0 }
  0x91   : > { %v272_v2 = vld [vmem:[%s226_s29] sm:$0x3] (!%p436_p4)  ;;  %v273_v3 = vld [vmem:[%s217_s2] sm:$0x3] (!%p436_p4)  ;;  %v276_v4 = vld [vmem:[%s1090_s0] sm:$0x3] (!%p436_p4) }
  0x92   : > { %271 = sbr.rel (%p436_p4) target bundleno = 155 (0x9b), region = 44  ;;  %v279_v5 = vsub.f32 (!%p436_p4), %v273_v3, %v276_v4  ;;  %v274_v6 = vld [vmem:[%s217_s2 + $0x2] sm:$0x3] (!%p436_p4)  ;;  %v277_v7 = vld [vmem:[%s1090_s0 + $0x2] sm:$0x3] (!%p436_p4) }
  0x93   : > { %v275_v8 = vld [vmem:[%s217_s2 + $0x4] sm:$0x3] (!%p436_p4)  ;;  %v280_v9 = vsub.f32 (!%p436_p4), %v274_v6, %v277_v7  ;;  %v278_v10 = vld [vmem:[%s1090_s0 + $0x4] sm:$0x3] (!%p436_p4) }
  0x94   : > { %v282_v11 = vmul.f32 (!%p436_p4), %v279_v5, %v272_v2  ;;  %v281_v12 = vsub.f32 (!%p436_p4), %v275_v8, %v278_v10 }
  0x95   : > { %v283_v13 = vmul.f32 (!%p436_p4), %v280_v9, %v272_v2 }
  0x96   : > { %v285_v14 = vadd.f32 (!%p436_p4), %v282_v11, %v276_v4  ;;  %v284_v15 = vmul.f32 (!%p436_p4), %v281_v12, %v272_v2 }
  0x97   : > { %v286_v16 = vadd.f32 (!%p436_p4), %v283_v13, %v277_v7 }
  0x98   : > { %288 = vst [vmem:[%s1090_s0] sm:$0x3] (!%p436_p4), %v285_v14  ;;  %v287_v17 = vadd.f32 (!%p436_p4), %v284_v15, %v278_v10 }
  0x99   : > { %289 = vst [vmem:[%s1090_s0 + $0x2] sm:$0x3] %v286_v16 }
  0x9a   : > { %290 = vst [vmem:[%s1090_s0 + $0x4] sm:$0x3] %v287_v17 }
  0x9b PF: > { %s1228_s28 = sld [smem:[#allocation12_spill]]  ;;  %s306_s23 = sshll.u32 %s1090_s0, 4  ;;  %s1109_s23 = int_to_ptr.vmem [resolvable:$true] %s306_s23 }
  0x9c   : > { %s1229_s18 = sld [smem:[#allocation17_spill]]  ;;  %s1113_s30 = scalar_lea.sflag [#allocation4], %s249_s3 }
  0x9d   : > { %s641_s27 = scalar_lea.vmem %s1109_s23, 96  ;;  %p1231_p6 = scmp.ne.s32.totalorder %s1220_s6, 0 }
  0x9e   : > { %p642_p13 = scmp.ne.s32.totalorder %s1109_s23, %s641_s27  ;;  %s797_s29 = smov [#allocation7]  }
  0x9f   : > { %s645_s5 = sshll.u32 %s797_s29, 4  ;;  %s646_s5 = int_to_ptr.vmem [resolvable:$false] %s645_s5 }
  0xa0   : > { %p643_p3 = pnand %p642_p13, %p1231_p6  ;;  %s647_s0 = scalar_lea.vmem %s646_s5, 192 }
  0xa1   : > { %s445_s26 = smul.u32 96, %s1228_s28  ;;  %p648_p1 = scmp.lt.s32.totalorder %s1109_s23, %s646_s5 }
  0xa2   : > { %s1230_s2 = smov %s1229_s18  ;;  %p644_p0 = pneg %p643_p3 }
  0xa3   : > { %s1107_s15 = scalar_lea.hbm %s1229_s18, %s445_s26  ;;  %p649_p11 = scmp.lt.s32.totalorder %s647_s0, %s641_s27 }
  0xa5   : > { %p650_p8 = por %p649_p11, %p648_p1 }
  0xa7   : > { %p651_p2 = pnand %p650_p8, %p644_p0 }
  0xa9   : > { %654 = shalt.err (!%p651_p2)
}
  0xaa   : > { %s655_s3 = scalar_lea.hbm %s1107_s15, 96  ;;  %s659_s28 = scalar_lea.hbm %s1230_s2, 192 }
  0xab   : > { %p656_p10 = scmp.ne.s32.totalorder %s1107_s15, %s655_s3  ;;  %p660_p9 = scmp.lt.u32.totalorder %s1107_s15, %s1230_s2 }
  0xac   : > { %p661_p5 = scmp.lt.u32.totalorder %s659_s28, %s655_s3  ;;  %p663_p13 = scmp.lt.u32.totalorder %s655_s3, %s1107_s15 }
  0xad   : > { %p657_p12 = pnand %p656_p10, %p1231_p6 }
  0xae   : > { %p662_p4 = por %p661_p5, %p660_p9 }
  0xaf   : > { %p658_p7 = pneg %p657_p12 }
  0xb0   : > { %p664_p3 = por %p663_p13, %p662_p4 }
  0xb2   : > { %p665_p0 = pnand %p664_p3, %p658_p7 }
  0xb4   : > { %668 = shalt.err (!%p665_p0)
}
  0xb5   : > { %s798_s25 = smov 32   ;;  %s799_s18 = smov 2  }
  0xb6   : > { %450 = dma.vmem_to_hbm [thread:$0]  (%p1231_p6), %s1109_s23, 96, %s1107_s15, %s1113_s30, %s798_s25, %s798_s25, %s799_s18  }
  0xb7 PF: > { %p464_p1 = scmp.ge.s32.totalorder %s791_s22, 2  ;;  %s321_s27 = sand.u32 1, %s739_s9  }
  0xb8   : > { %p1232_p11 = scmp.ne.s32.totalorder %s1221_s4, 0  ;;  %s322_s29 = scalar_lea.sflag [#allocation4], %s321_s27 }
  0xba   : > { %p460_p8 = pnand %p464_p1, %p1232_p11 }
  0xbc   : > { %734 = dma.done.wait (!%p460_p8), %s322_s29, 96  }
  0xbd   : > { %736 = vsyncadd (!%p460_p8), %s322_s29, 4294967200  ;;  %s21_s22 = sadd.s32 1, %s791_s22   ;;  %s1234_s6 = smov %s1029_s12 }
  0xbe   : > { %p1142_p2 = scmp.ge.s32.totalorder %s21_s22, 10   ;;  %s1235_s18 = sld [smem:[#allocation13_spill]] }
  0xbf   : > { %s1236_s20 = sld [smem:[#allocation14_spill]]  ;;  %s1237_s4 = sld [smem:[#allocation15_spill]] }
  0xc0   : > { %s1238_s9 = smov %s743_s10  ;;  %s1239_s10 = smov %s747_s11 }
  0xc1   : > { %s1240_s11 = smov %s1012_s8  ;;  %s1241_s12 = smov %s755_s13 }
  0xc2   : > { %s1242_s13 = smov %s759_s14  ;;  %s1243_s14 = smov %s1234_s6 }
  0xc3   : > { %s1244_s15 = smov %s767_s16  ;;  %s1245_s16 = smov %s771_s17 }
  0xc4   : > { %s1246_s17 = smov %s995_s7  ;;  %s1247_s19 = smov %s787_s21 }
  0xc5   : > { %s1248_s21 = smov %s1237_s4  ;;  %20 = sbr.rel (!%p1142_p2) target bundleno = 15 (0xf), region = 94 }
  0xcc   :  { %327 = vsyncpa [#allocation3], 1 }
  0xcd   :  { %329 = vsyncpa [#allocation3 + $0x1], 1 }
  0xce   :  { %330 = vsyncpa [#allocation6], 1 }
  0xcf   :  { %332 = vsyncpa [#allocation6 + $0x1], 1 }
  0xd0   :  { %333 = vsyncpa [#allocation4], 1 }
  0xd1   :  { %335 = vsyncpa [#allocation4 + $0x1], 1 }

</bundles_post_ra>
